<compile_context>
chip_gen: v6e
topology: v6e:2x2x1
jax: 0.10.0
libtpu: 0.0.40
codegen_flags: <defaults>
</compile_context>

<pallas_src>
import functools

import jax
import jax.numpy as jnp
from jax.experimental import pallas as pl
from jax.experimental.pallas import tpu as pltpu


def _bbox_kernel(mean_ref, std_ref, boxes_ref, deltas_ref, out_ref):
    """Tiles are (tile_r, 128); lanes interleave x1,y1,x2,y2 with period 4."""
    b = boxes_ref[...]
    d = deltas_ref[...]
    n_lanes = b.shape[-1]  # 128

    lane = jax.lax.broadcasted_iota(jnp.int32, b.shape, dimension=1)
    is_low = (lane & 3) < 2  # lanes holding x1/y1 (and dx/dy)

    # Align each box's partner coordinate onto the current lane.
    # pltpu.roll follows jnp.roll semantics: roll(x, s)[l] == x[l - s].
    b_m2 = pltpu.roll(b, shift=2, axis=1)             # lane l sees lane l-2
    b_p2 = pltpu.roll(b, shift=n_lanes - 2, axis=1)   # lane l sees lane l+2

    low = jnp.where(is_low, b, b_m2)    # x1 / y1 on every lane
    high = jnp.where(is_low, b_p2, b)   # x2 / y2 on every lane

    size = high - low                   # widths on x-lanes, heights on y-lanes
    ctr = low + 0.5 * size              # ctr_x / ctr_y on every lane

    d_sc = d * std_ref[...] + mean_ref[...]
    d_m2 = pltpu.roll(d_sc, shift=2, axis=1)
    d_p2 = pltpu.roll(d_sc, shift=n_lanes - 2, axis=1)

    d_off = jnp.where(is_low, d_sc, d_m2)   # dx / dy on every lane
    d_siz = jnp.where(is_low, d_p2, d_sc)   # dw / dh on every lane

    pred_ctr = ctr + d_off * size
    pred_size = jnp.exp(d_siz) * size

    out_ref[...] = jnp.where(
        is_low, pred_ctr - 0.5 * pred_size, pred_ctr + 0.5 * pred_size
    )


@functools.partial(jax.jit, static_argnames=("tile_r",))
def _bbox_transform_impl(boxes, deltas, mean, std, *, tile_r=2048):
    B, N, C = boxes.shape
    assert C == 4
    BN = B * N

    boxes_f = boxes.reshape(BN, 4).astype(jnp.float32)
    deltas_f = deltas.reshape(BN, 4).astype(jnp.float32)

    # 32 boxes (128 f32) per lane row; pad the box count if needed (usually 0).
    pad = (-BN) % 32
    if pad:
        boxes_f = jnp.pad(boxes_f, ((0, pad), (0, 0)))
        deltas_f = jnp.pad(deltas_f, ((0, pad), (0, 0)))
    R = (BN + pad) // 32

    boxes2d = boxes_f.reshape(R, 128)    # free: row-major bitcast, no transpose
    deltas2d = deltas_f.reshape(R, 128)

    mean_lane = jnp.tile(mean.astype(jnp.float32).reshape(4), 32).reshape(1, 128)
    std_lane = jnp.tile(std.astype(jnp.float32).reshape(4), 32).reshape(1, 128)

    # Big lane-dense blocks: tile_r x 128 f32 = 1 MiB at the default tile_r.
    if R <= tile_r:
        tr = R                            # full extent (valid even if not %8)
    else:
        tr = max(8, (tile_r // 8) * 8)    # keep the (8, 128) rule
    grid = (pl.cdiv(R, tr),)

    data_spec = pl.BlockSpec((tr, 128), lambda i: (i, 0))
    lane_spec = pl.BlockSpec((1, 128), lambda i: (0, 0))

    out2d = pl.pallas_call(
        _bbox_kernel,
        out_shape=jax.ShapeDtypeStruct((R, 128), jnp.float32),
        grid=grid,
        in_specs=[lane_spec, lane_spec, data_spec, data_spec],
        out_specs=data_spec,
        compiler_params=pltpu.CompilerParams(
            dimension_semantics=("parallel",)
        ),
    )(mean_lane, std_lane, boxes2d, deltas2d)

    return out2d.reshape(-1, 4)[:BN].reshape(B, N, 4)


def bbox_transform(boxes, deltas, mean=None, std=None, *, tile_r=2048):
    """boxes, deltas: [B, N, 4] -> pred_boxes [B, N, 4] float32."""
    if mean is None:
        mean = jnp.array([0.0, 0.0, 0.0, 0.0], dtype=jnp.float32)
    if std is None:
        std = jnp.array([0.1, 0.1, 0.2, 0.2], dtype=jnp.float32)
    return _bbox_transform_impl(boxes, deltas, mean, std, tile_r=tile_r)


def bbox_transform_ref(boxes, deltas, mean, std):
    """Pure-JAX reference matching the PyTorch forward semantics."""
    widths = boxes[:, :, 2] - boxes[:, :, 0]
    heights = boxes[:, :, 3] - boxes[:, :, 1]
    ctr_x = boxes[:, :, 0] + 0.5 * widths
    ctr_y = boxes[:, :, 1] + 0.5 * heights
    dx = deltas[:, :, 0] * std[0] + mean[0]
    dy = deltas[:, :, 1] * std[1] + mean[1]
    dw = deltas[:, :, 2] * std[2] + mean[2]
    dh = deltas[:, :, 3] * std[3] + mean[3]
    pred_ctr_x = ctr_x + dx * widths
    pred_ctr_y = ctr_y + dy * heights
    pred_w = jnp.exp(dw) * widths
    pred_h = jnp.exp(dh) * heights
    return jnp.stack(
        [
            pred_ctr_x - 0.5 * pred_w,
            pred_ctr_y - 0.5 * pred_h,
            pred_ctr_x + 0.5 * pred_w,
            pred_ctr_y + 0.5 * pred_h,
        ],
        axis=2,
    )


if __name__ == "__main__":
    key = jax.random.PRNGKey(0)
    k1, k2, k3 = jax.random.split(key, 3)

    B, N = 2, 256  # batch, number of anchor boxes

    # Plausible boxes: x1<x2, y1<y2, in a ~512x512 image.
    xy1 = jax.random.uniform(k1, (B, N, 2), jnp.float32, 0.0, 400.0)
    wh = jax.random.uniform(k2, (B, N, 2), jnp.float32, 4.0, 100.0)
    boxes = jnp.concatenate([xy1, xy1 + wh], axis=2)         # [B, N, 4]
    deltas = jax.random.normal(k3, (B, N, 4), jnp.float32)   # [B, N, 4]

    mean = jnp.array([0.0, 0.0, 0.0, 0.0], dtype=jnp.float32)
    std = jnp.array([0.1, 0.1, 0.2, 0.2], dtype=jnp.float32)

    out = jax.block_until_ready(bbox_transform(boxes, deltas, mean, std))
    ref = bbox_transform_ref(boxes, deltas, mean, std)
    assert out.shape == (B, N, 4) and out.dtype == jnp.float32
    assert jnp.allclose(out, ref, rtol=1e-5, atol=1e-4), "mismatch vs reference"

    # Also exercise the non-multiple-of-32 (padded) path once.
    out2 = jax.block_until_ready(bbox_transform(boxes[:1, :100], deltas[:1, :100]))
    ref2 = bbox_transform_ref(boxes[:1, :100], deltas[:1, :100], mean, std)
    assert jnp.allclose(out2, ref2, rtol=1e-5, atol=1e-4), "mismatch (padded path)"

    print("KERNEL_OK")
</pallas_src>

<mosaic_0001>
module attributes {stable_mosaic.version = 11 : i64} {
  func.func @_bbox_kernel(%arg0: i32, %arg1: memref<1x128xf32, #tpu.memory_space<vmem>>, %arg2: memref<1x128xf32, #tpu.memory_space<vmem>>, %arg3: memref<16x128xf32, #tpu.memory_space<vmem>>, %arg4: memref<16x128xf32, #tpu.memory_space<vmem>>, %arg5: memref<16x128xf32, #tpu.memory_space<vmem>>) attributes {dimension_semantics = [#tpu.dimension_semantics<parallel>], iteration_bounds = array<i64: 1>, scalar_prefetch = 0 : i64, scratch_operands = 0 : i64, tpu.core_type = #tpu.core_type<tc>, window_params = [{pipeline_mode = #tpu.pipeline_mode<synchronous>, transform_indices = @transform_0, window_bounds = array<i64: 1, 128>}, {pipeline_mode = #tpu.pipeline_mode<synchronous>, transform_indices = @transform_1, window_bounds = array<i64: 1, 128>}, {transform_indices = @transform_2, window_bounds = array<i64: 16, 128>}, {transform_indices = @transform_3, window_bounds = array<i64: 16, 128>}, {transform_indices = @transform_4, window_bounds = array<i64: 16, 128>}]} {
    %c0 = arith.constant 0 : index
    %c0_0 = arith.constant 0 : index
    %0 = vector.load %arg3[%c0, %c0_0] : memref<16x128xf32, #tpu.memory_space<vmem>>, vector<16x128xf32>
    %c0_1 = arith.constant 0 : index
    %c0_2 = arith.constant 0 : index
    %1 = vector.load %arg4[%c0_1, %c0_2] : memref<16x128xf32, #tpu.memory_space<vmem>>, vector<16x128xf32>
    %2 = tpu.iota {dimensions = array<i32: 1>} : vector<16x128xi32>
    %c3_i32 = arith.constant 3 : i32
    %3 = vector.broadcast %c3_i32 : i32 to vector<16x128xi32>
    %4 = arith.andi %2, %3 : vector<16x128xi32>
    %c2_i32 = arith.constant 2 : i32
    %5 = vector.broadcast %c2_i32 : i32 to vector<16x128xi32>
    %6 = arith.cmpi slt, %4, %5 : vector<16x128xi32>
    %c2_i32_3 = arith.constant 2 : i32
    %7 = tpu.dynamic_rotate %0 by %c2_i32_3 dim 1 : vector<16x128xf32>, i32 -> vector<16x128xf32>
    %c126_i32 = arith.constant 126 : i32
    %8 = tpu.dynamic_rotate %0 by %c126_i32 dim 1 : vector<16x128xf32>, i32 -> vector<16x128xf32>
    %9 = arith.select %6, %0, %7 : vector<16x128xi1>, vector<16x128xf32>
    %10 = arith.select %6, %8, %0 : vector<16x128xi1>, vector<16x128xf32>
    %11 = arith.subf %10, %9 : vector<16x128xf32>
    %cst = arith.constant 5.000000e-01 : f32
    %12 = vector.broadcast %cst : f32 to vector<16x128xf32>
    %13 = arith.mulf %12, %11 : vector<16x128xf32>
    %14 = arith.addf %9, %13 : vector<16x128xf32>
    %c0_4 = arith.constant 0 : index
    %c0_5 = arith.constant 0 : index
    %15 = vector.load %arg2[%c0_4, %c0_5] : memref<1x128xf32, #tpu.memory_space<vmem>>, vector<1x128xf32>
    %16 = vector.broadcast %15 : vector<1x128xf32> to vector<16x128xf32>
    %17 = arith.mulf %1, %16 : vector<16x128xf32>
    %c0_6 = arith.constant 0 : index
    %c0_7 = arith.constant 0 : index
    %18 = vector.load %arg1[%c0_6, %c0_7] : memref<1x128xf32, #tpu.memory_space<vmem>>, vector<1x128xf32>
    %19 = vector.broadcast %18 : vector<1x128xf32> to vector<16x128xf32>
    %20 = arith.addf %17, %19 : vector<16x128xf32>
    %c2_i32_8 = arith.constant 2 : i32
    %21 = tpu.dynamic_rotate %20 by %c2_i32_8 dim 1 : vector<16x128xf32>, i32 -> vector<16x128xf32>
    %c126_i32_9 = arith.constant 126 : i32
    %22 = tpu.dynamic_rotate %20 by %c126_i32_9 dim 1 : vector<16x128xf32>, i32 -> vector<16x128xf32>
    %23 = arith.select %6, %20, %21 : vector<16x128xi1>, vector<16x128xf32>
    %24 = arith.select %6, %22, %20 : vector<16x128xi1>, vector<16x128xf32>
    %25 = arith.mulf %23, %11 : vector<16x128xf32>
    %26 = arith.addf %14, %25 : vector<16x128xf32>
    %27 = math.exp %24 : vector<16x128xf32>
    %28 = arith.mulf %27, %11 : vector<16x128xf32>
    %cst_10 = arith.constant 5.000000e-01 : f32
    %29 = vector.broadcast %cst_10 : f32 to vector<16x128xf32>
    %30 = arith.mulf %29, %28 : vector<16x128xf32>
    %31 = arith.subf %26, %30 : vector<16x128xf32>
    %cst_11 = arith.constant 5.000000e-01 : f32
    %32 = vector.broadcast %cst_11 : f32 to vector<16x128xf32>
    %33 = arith.mulf %32, %28 : vector<16x128xf32>
    %34 = arith.addf %26, %33 : vector<16x128xf32>
    %35 = arith.select %6, %31, %34 : vector<16x128xi1>, vector<16x128xf32>
    %c0_12 = arith.constant 0 : index
    %c0_13 = arith.constant 0 : index
    %36 = vector.load %arg5[%c0_12, %c0_13] : memref<16x128xf32, #tpu.memory_space<vmem>>, vector<16x128xf32>
    tpu.vector_store %arg5[%c0_12, %c0_13], %35 {strides = array<i32>} : memref<16x128xf32, #tpu.memory_space<vmem>>, vector<16x128xf32>,
    return
  }
  func.func @transform_0(%arg0: i32) -> (i32, i32) {
    %c0_i32 = arith.constant 0 : i32
    %c0_i32_0 = arith.constant 0 : i32
    %c0_i32_1 = arith.constant 0 : i32
    return %c0_i32, %c0_i32_0 : i32, i32
  }
  func.func @transform_1(%arg0: i32) -> (i32, i32) {
    %c0_i32 = arith.constant 0 : i32
    %c0_i32_0 = arith.constant 0 : i32
    %c0_i32_1 = arith.constant 0 : i32
    return %c0_i32, %c0_i32_0 : i32, i32
  }
  func.func @transform_2(%arg0: i32) -> (i32, i32) {
    %c0_i32 = arith.constant 0 : i32
    %c0_i32_0 = arith.constant 0 : i32
    return %arg0, %c0_i32 : i32, i32
  }
  func.func @transform_3(%arg0: i32) -> (i32, i32) {
    %c0_i32 = arith.constant 0 : i32
    %c0_i32_0 = arith.constant 0 : i32
    return %arg0, %c0_i32 : i32, i32
  }
  func.func @transform_4(%arg0: i32) -> (i32, i32) {
    %c0_i32 = arith.constant 0 : i32
    %c0_i32_0 = arith.constant 0 : i32
    return %arg0, %c0_i32 : i32, i32
  }
}

</mosaic_0001>

<bundles_post_ra>
// kernel: tile.13
= control target key start
LH: loop header
LB: loop body
LE: loop exit
PB: predicated region body
PF: predicated region fallthrough
CT: control target
= control target key end

     0   :  { %s40_s0 = inlined_call_operand.vmem [shape: f32[4], index: 0, kind: input, shape index: {}]   ;;  %s41_s1 = inlined_call_operand.vmem [shape: f32[32,4], index: 1, kind: output, shape index: {}]  }
   0x1   :  { %v4_v0 = vld [vmem:[%s40_s0] ss:$0 sm:$0xff] }
   0x2   :  { %5 = vst [vmem:[%s41_s1] sm:$0xff] %v4_v0  ;;  %12 = vst [vmem:[%s41_s1 + $0x8] sm:$0xff] %v4_v0 }
   0x3   :  { %13 = vst [vmem:[%s41_s1 + $0x10] sm:$0xff] %v4_v0  ;;  %14 = vst [vmem:[%s41_s1 + $0x18] sm:$0xff] %v4_v0 }

// kernel: tile.14
= control target key start
LH: loop header
LB: loop body
LE: loop exit
PB: predicated region body
PF: predicated region fallthrough
CT: control target
= control target key end

     0   :  { %s261_s10 = smov 124   ;;  %s262_s11 = smov 116   ;;  %vm3_vm0 = vcmask 31744   ;;  %vm9_vm1 = vcmask 1048544   ;;  %vm15_vm2 = vcmask 1015744   ;;  %vm21_vm3 = vcmask 982944   ;;  %s401_s0 = inlined_call_operand.vmem [shape: f32[32,4], index: 0, kind: input, shape index: {}]   ;;  %s402_s1 = inlined_call_operand.vmem [shape: f32[1,128], index: 1, kind: output, shape index: {}]  }
   0x1   :  { %v199_v0 = vld [vmem:[%s401_s0 + $0x1f] sm:$0x1]   ;;  %v201_v1 = vld [vmem:[%s401_s0 + $0x1d] sm:$0x1]   ;;  %v200_v2 = vld [vmem:[%s401_s0 + $0x1e] sm:$0x1]  }
   0x2   :  { %7 = vrot.lane.b32.xlu0 %v199_v0, %s261_s10  ;;  %19 = vrot.lane.b32.xlu1 %v201_v1, %s262_s11  ;;  %v202_v3 = vld [vmem:[%s401_s0 + $0x1c] sm:$0x1]   ;;  %s263_s16 = smov 120   ;;  %s264_s17 = smov 112   ;;  %v203_v4 = vld [vmem:[%s401_s0 + $0x1b] sm:$0x1]  }
   0x3   :  { %v204_v5 = vld [vmem:[%s401_s0 + $0x1a] sm:$0x1]   ;;  %s265_s22 = smov 108   ;;  %s266_s23 = smov 104   ;;  %v205_v6 = vld [vmem:[%s401_s0 + $0x19] sm:$0x1]  }
   0x4   :  { %v206_v7 = vld [vmem:[%s401_s0 + $0x18] sm:$0x1]   ;;  %s267_s28 = smov 100   ;;  %s268_s29 = smov 96   ;;  %v207_v8 = vld [vmem:[%s401_s0 + $0x17] sm:$0x1]  }
   0x5   :  { %v208_v9 = vld [vmem:[%s401_s0 + $0x16] sm:$0x1]   ;;  %v2_v10 = vld [vmem:[%s401_s0] sm:$0x1]   ;;  %s269_s7 = smov 92   ;;  %s270_s8 = smov 88  }
   0x6   :  { %13 = vrot.lane.b32.xlu0 %v200_v2, %s263_s16  ;;  %25 = vrot.lane.b32.xlu1 %v202_v3, %s264_s17  ;;  %4 = vst.msk [vmem:[#allocation0] sm:$0x1] %vm3_vm0, %v2_v10   ;;  %v209_v11 = vld [vmem:[%s401_s0 + $0x15] sm:$0x1]   ;;  %v210_v12 = vld [vmem:[%s401_s0 + $0x14] sm:$0x1]  }
   0x7   :  { %s271_s13 = smov 84   ;;  %s272_s14 = smov 80   ;;  %v211_v13 = vld [vmem:[%s401_s0 + $0x13] sm:$0x1]   ;;  %v212_v14 = vld [vmem:[%s401_s0 + $0x12] sm:$0x1]  }
   0x8   :  { %s273_s19 = smov 76   ;;  %s274_s20 = smov 72   ;;  %v213_v15 = vld [vmem:[%s401_s0 + $0x11] sm:$0x1]   ;;  %v214_v16 = vld [vmem:[%s401_s0 + $0x10] sm:$0x1]  }
   0x9   :  { %s275_s25 = smov 68   ;;  %s276_s26 = smov 64   ;;  %v215_v17 = vld [vmem:[%s401_s0 + $0xf] sm:$0x1]   ;;  %v216_v18 = vld [vmem:[%s401_s0 + $0xe] sm:$0x1]  }
   0xa   :  { %31 = vrot.lane.b32.xlu0 %v203_v4, %s265_s22  ;;  %37 = vrot.lane.b32.xlu1 %v204_v5, %s266_s23  ;;  %s277_s2 = smov 60   ;;  %s278_s3 = smov 56   ;;  %v217_v19 = vld [vmem:[%s401_s0 + $0xd] sm:$0x1]   ;;  %v218_v20 = vld [vmem:[%s401_s0 + $0xc] sm:$0x1]  }
   0xb   :  { %s280_s9 = smov 48   ;;  %v219_v21 = vld [vmem:[%s401_s0 + $0xb] sm:$0x1]   ;;  %v220_v22 = vld [vmem:[%s401_s0 + $0xa] sm:$0x1]   ;;  %s282_s15 = smov 40  }
   0xc   :  { %v221_v23 = vld [vmem:[%s401_s0 + $0x9] sm:$0x1]   ;;  %v222_v24 = vld [vmem:[%s401_s0 + $0x8] sm:$0x1]   ;;  %s284_s21 = smov 32   ;;  %s286_s27 = smov 24  }
   0xd   :  { %v223_v25 = vld [vmem:[%s401_s0 + $0x7] sm:$0x1]   ;;  %v224_v26 = vld [vmem:[%s401_s0 + $0x6] sm:$0x1]   ;;  %v225_v27 = vld [vmem:[%s401_s0 + $0x5] sm:$0x1]  }
   0xe   :  { %43 = vrot.lane.b32.xlu0 %v205_v6, %s267_s28  ;;  %49 = vrot.lane.b32.xlu1 %v206_v7, %s268_s29  ;;  %v226_v28 = vld [vmem:[%s401_s0 + $0x4] sm:$0x1]   ;;  %s288_s4 = smov 16   ;;  %v227_v29 = vld [vmem:[%s401_s0 + $0x3] sm:$0x1]   ;;  %s290_s10 = smov 8  }
   0xf   :  { %v228_v30 = vld [vmem:[%s401_s0 + $0x2] sm:$0x1]   ;;  %v229_v31 = vld [vmem:[%s401_s0 + $0x1] sm:$0x1]   ;;  %s291_s0 = smov 4   ;;  %vm27_vm4 = vcmask 950144  }
  0x10   :  { %vm33_vm5 = vcmask 917344   ;;  %vm39_vm6 = vcmask 884544   ;;  %vm45_vm7 = vcmask 851744   ;;  %vm51_vm8 = vcmask 818944  }
  0x11   :  { %vm57_vm9 = vcmask 786144   ;;  %vm63_vm10 = vcmask 753344   ;;  %vm69_vm11 = vcmask 720544   ;;  %vm75_vm12 = vcmask 687744  }
  0x12   :  { %55 = vrot.lane.b32.xlu0 %v207_v8, %s269_s7  ;;  %61 = vrot.lane.b32.xlu1 %v208_v9, %s270_s8  ;;  %s279_s8 = smov 52   ;;  %vm81_vm13 = vcmask 654944   ;;  %vm87_vm14 = vcmask 622144   ;;  %vm93_vm15 = vcmask 589344   ;;  %vm99_vm0 = vcmask 556544  }
  0x16   :  { %67 = vrot.lane.b32.xlu0 %v209_v11, %s271_s13  ;;  %73 = vrot.lane.b32.xlu1 %v210_v12, %s272_s14  ;;  %s281_s14 = smov 44  }
  0x1a   :  { %79 = vrot.lane.b32.xlu0 %v211_v13, %s273_s19  ;;  %85 = vrot.lane.b32.xlu1 %v212_v14, %s274_s20  ;;  %s283_s20 = smov 36  }
  0x1e   :  { %91 = vrot.lane.b32.xlu0 %v213_v15, %s275_s25  ;;  %97 = vrot.lane.b32.xlu1 %v214_v16, %s276_s26  ;;  %s285_s26 = smov 28  }
  0x22   :  { %103 = vrot.lane.b32.xlu0 %v215_v17, %s277_s2  ;;  %109 = vrot.lane.b32.xlu1 %v216_v18, %s278_s3  ;;  %s287_s3 = smov 20  }
  0x26   :  { %115 = vrot.lane.b32.xlu0 %v217_v19, %s279_s8  ;;  %121 = vrot.lane.b32.xlu1 %v218_v20, %s280_s9  ;;  %s289_s9 = smov 12  }
  0x2a   :  { %127 = vrot.lane.b32.xlu0 %v219_v21, %s281_s14  ;;  %133 = vrot.lane.b32.xlu1 %v220_v22, %s282_s15 }
  0x2e   :  { %139 = vrot.lane.b32.xlu0 %v221_v23, %s283_s20  ;;  %145 = vrot.lane.b32.xlu1 %v222_v24, %s284_s21 }
  0x32   :  { %151 = vrot.lane.b32.xlu0 %v223_v25, %s285_s26  ;;  %157 = vrot.lane.b32.xlu1 %v224_v26, %s286_s27 }
  0x36   :  { %163 = vrot.lane.b32.xlu0 %v225_v27, %s287_s3  ;;  %169 = vrot.lane.b32.xlu1 %v226_v28, %s288_s4 }
  0x3a   :  { %175 = vrot.lane.b32.xlu0 %v227_v29, %s289_s9  ;;  %181 = vrot.lane.b32.xlu1 %v228_v30, %s290_s10 }
  0x3e   :  { %187 = vrot.lane.b32.xlu0 %v229_v31, %s291_s0 }
  0x74   :  { %v8_v32 = vpop.permute.xlu0 %7   ;;  %v20_v33 = vpop.permute.xlu1 %19  }
  0x75   :  { %10 = vst.msk [vmem:[#allocation0] sm:$0x1] %vm9_vm1, %v8_v32   ;;  %vm105_vm1 = vcmask 523744  }
  0x78   :  { %v14_v34 = vpop.permute.xlu0 %13   ;;  %v26_v35 = vpop.permute.xlu1 %25  }
  0x79   :  { %16 = vst.msk [vmem:[#allocation0] sm:$0x1] %vm15_vm2, %v14_v34   ;;  %vm111_vm2 = vcmask 490944  }
  0x7a   :  { %22 = vst.msk [vmem:[#allocation0] sm:$0x1] %vm21_vm3, %v20_v33   ;;  %vm117_vm3 = vcmask 458144  }
  0x7b   :  { %28 = vst.msk [vmem:[#allocation0] sm:$0x1] %vm27_vm4, %v26_v35   ;;  %vm123_vm4 = vcmask 425344  }
  0x7c   :  { %v32_v36 = vpop.permute.xlu0 %31   ;;  %v38_v37 = vpop.permute.xlu1 %37  }
  0x7d   :  { %34 = vst.msk [vmem:[#allocation0] sm:$0x1] %vm33_vm5, %v32_v36   ;;  %vm129_vm5 = vcmask 392544  }
  0x7e   :  { %40 = vst.msk [vmem:[#allocation0] sm:$0x1] %vm39_vm6, %v38_v37   ;;  %vm135_vm6 = vcmask 359744  }
  0x80   :  { %v44_v38 = vpop.permute.xlu0 %43   ;;  %v50_v39 = vpop.permute.xlu1 %49  }
  0x81   :  { %46 = vst.msk [vmem:[#allocation0] sm:$0x1] %vm45_vm7, %v44_v38   ;;  %vm141_vm7 = vcmask 326944  }
  0x82   :  { %52 = vst.msk [vmem:[#allocation0] sm:$0x1] %vm51_vm8, %v50_v39   ;;  %vm147_vm8 = vcmask 294144  }
  0x84   :  { %v56_v40 = vpop.permute.xlu0 %55   ;;  %v62_v41 = vpop.permute.xlu1 %61  }
  0x85   :  { %58 = vst.msk [vmem:[#allocation0] sm:$0x1] %vm57_vm9, %v56_v40   ;;  %vm153_vm9 = vcmask 261344  }
  0x86   :  { %64 = vst.msk [vmem:[#allocation0] sm:$0x1] %vm63_vm10, %v62_v41   ;;  %vm159_vm10 = vcmask 228544  }
  0x88   :  { %v68_v42 = vpop.permute.xlu0 %67   ;;  %v74_v43 = vpop.permute.xlu1 %73  }
  0x89   :  { %70 = vst.msk [vmem:[#allocation0] sm:$0x1] %vm69_vm11, %v68_v42   ;;  %vm165_vm11 = vcmask 195744  }
  0x8a   :  { %76 = vst.msk [vmem:[#allocation0] sm:$0x1] %vm75_vm12, %v74_v43   ;;  %vm171_vm12 = vcmask 162944  }
  0x8c   :  { %v80_v44 = vpop.permute.xlu0 %79   ;;  %v86_v45 = vpop.permute.xlu1 %85  }
  0x8d   :  { %82 = vst.msk [vmem:[#allocation0] sm:$0x1] %vm81_vm13, %v80_v44   ;;  %vm177_vm13 = vcmask 130144  }
  0x8e   :  { %88 = vst.msk [vmem:[#allocation0] sm:$0x1] %vm87_vm14, %v86_v45   ;;  %vm183_vm14 = vcmask 97344  }
  0x90   :  { %v92_v46 = vpop.permute.xlu0 %91   ;;  %v98_v47 = vpop.permute.xlu1 %97  }
  0x91   :  { %94 = vst.msk [vmem:[#allocation0] sm:$0x1] %vm93_vm15, %v92_v46   ;;  %vm189_vm15 = vcmask 64544  }
  0x92   :  { %100 = vst.msk [vmem:[#allocation0] sm:$0x1] %vm99_vm0, %v98_v47  }
  0x94   :  { %v104_v48 = vpop.permute.xlu0 %103   ;;  %v110_v49 = vpop.permute.xlu1 %109  }
  0x95   :  { %106 = vst.msk [vmem:[#allocation0] sm:$0x1] %vm105_vm1, %v104_v48  }
  0x96   :  { %112 = vst.msk [vmem:[#allocation0] sm:$0x1] %vm111_vm2, %v110_v49  }
  0x98   :  { %v116_v50 = vpop.permute.xlu0 %115   ;;  %v122_v51 = vpop.permute.xlu1 %121  }
  0x99   :  { %118 = vst.msk [vmem:[#allocation0] sm:$0x1] %vm117_vm3, %v116_v50  }
  0x9a   :  { %124 = vst.msk [vmem:[#allocation0] sm:$0x1] %vm123_vm4, %v122_v51  }
  0x9c   :  { %v128_v52 = vpop.permute.xlu0 %127   ;;  %v134_v53 = vpop.permute.xlu1 %133  }
  0x9d   :  { %130 = vst.msk [vmem:[#allocation0] sm:$0x1] %vm129_vm5, %v128_v52  }
  0x9e   :  { %136 = vst.msk [vmem:[#allocation0] sm:$0x1] %vm135_vm6, %v134_v53  }
  0xa0   :  { %v140_v54 = vpop.permute.xlu0 %139   ;;  %v146_v55 = vpop.permute.xlu1 %145  }
  0xa1   :  { %142 = vst.msk [vmem:[#allocation0] sm:$0x1] %vm141_vm7, %v140_v54  }
  0xa2   :  { %148 = vst.msk [vmem:[#allocation0] sm:$0x1] %vm147_vm8, %v146_v55  }
  0xa4   :  { %v152_v56 = vpop.permute.xlu0 %151   ;;  %v158_v57 = vpop.permute.xlu1 %157  }
  0xa5   :  { %154 = vst.msk [vmem:[#allocation0] sm:$0x1] %vm153_vm9, %v152_v56  }
  0xa6   :  { %160 = vst.msk [vmem:[#allocation0] sm:$0x1] %vm159_vm10, %v158_v57  }
  0xa8   :  { %v164_v58 = vpop.permute.xlu0 %163   ;;  %v170_v59 = vpop.permute.xlu1 %169  }
  0xa9   :  { %166 = vst.msk [vmem:[#allocation0] sm:$0x1] %vm165_vm11, %v164_v58  }
  0xaa   :  { %172 = vst.msk [vmem:[#allocation0] sm:$0x1] %vm171_vm12, %v170_v59  }
  0xac   :  { %v176_v60 = vpop.permute.xlu0 %175   ;;  %v182_v61 = vpop.permute.xlu1 %181  }
  0xad   :  { %178 = vst.msk [vmem:[#allocation0] sm:$0x1] %vm177_vm13, %v176_v60  }
  0xae   :  { %184 = vst.msk [vmem:[#allocation0] sm:$0x1] %vm183_vm14, %v182_v61  }
  0xb0   :  { %v188_v62 = vpop.permute.xlu0 %187  }
  0xb1   :  { %190 = vst.msk [vmem:[#allocation0] sm:$0x1] %vm189_vm15, %v188_v62  }
  0xb8   :  { %v195_v63 = vld [vmem:[#allocation0] sm:$0x1] }
  0xb9   :  { %198 = vst [vmem:[%s402_s1] sm:$0x1] %v195_v63 }

// kernel: _bbox_transform_impl.1
= control target key start
LH: loop header
LB: loop body
LE: loop exit
PB: predicated region body
PF: predicated region fallthrough
CT: control target
= control target key end

     0   :  { %s105_s21 = smov 2   ;;  %s106_s28 = smov 126   ;;  %v21_v10 = vlaneseq  ;;  %s180_s2 = inlined_call_operand.vmem [shape: f32[16,128], index: 2, kind: input, shape index: {}]   ;;  %s181_s0 = inlined_call_operand.vmem [shape: f32[1,128], index: 0, kind: input, shape index: {}]   ;;  %s182_s1 = inlined_call_operand.vmem [shape: f32[1,128], index: 1, kind: input, shape index: {}]   ;;  %s183_s3 = inlined_call_operand.vmem [shape: f32[16,128], index: 3, kind: input, shape index: {}]   ;;  %s184_s4 = inlined_call_operand.vmem [shape: f32[16,128], index: 4, kind: output, shape index: {}]  }
   0x1   :  { %v17_v0 = vld [vmem:[%s180_s2] sm:$0xff]  ;;  %v20_v5 = vld [vmem:[%s183_s3 + $0x8] sm:$0xff] }
   0x2   :  { %v19_v1 = vld [vmem:[%s183_s3] sm:$0xff]  ;;  %25 = vrot.lane.b32.xlu1 %v17_v0, %s105_s21  ;;  %v18_v6 = vld [vmem:[%s180_s2 + $0x8] sm:$0xff]  ;;  %v22_v11 = vand.u32 127, %v21_v10 }
   0x3   :  { %v97_v2 = vld [vmem:[%s182_s1] ss:$0 sm:$0xff] }
   0x4   :  { %v50_v3 = vmul.f32 %v97_v2, %v19_v1  ;;  %v98_v4 = vld [vmem:[%s181_s0] ss:$0 sm:$0xff]  ;;  %v51_v7 = vmul.f32 %v97_v2, %v20_v5  ;;  %v23_v12 = vand.u32 3, %v22_v11 }
   0x6   :  { %v59_v8 = vadd.f32 %v98_v4, %v50_v3  ;;  %27 = vrot.lane.b32.xlu1 %v18_v6, %s105_s21  ;;  %v60_v9 = vadd.f32 %v98_v4, %v51_v7  ;;  %vm150_vm0 = vcmp.lt.s32.totalorder %v23_v12, 2 }
   0x8   :  { %65 = vrot.lane.b32.xlu0 %v59_v8, %s106_s28 }
   0xa   :  { %31 = vrot.lane.b32.xlu1 %v18_v6, %s106_s28 }
   0xc   :  { %67 = vrot.lane.b32.xlu0 %v60_v9, %s106_s28 }
   0xe   :  { %63 = vrot.lane.b32.xlu1 %v60_v9, %s105_s21 }
  0x10   :  { %29 = vrot.lane.b32.xlu0 %v17_v0, %s106_s28 }
  0x14   :  { %61 = vrot.lane.b32.xlu0 %v59_v8, %s105_s21 }
  0x74   :  { %v26_v13 = vpop.permute.xlu1 %25 }
  0x75   :  { %v33_v23 = vsel %vm150_vm0, %v17_v0, %v26_v13 }
  0x78   :  { %v28_v16 = vpop.permute.xlu1 %27 }
  0x79   :  { %v34_v25 = vsel %vm150_vm0, %v18_v6, %v28_v16 }
  0x7a   :  { %v66_v15 = vpop.permute.xlu0 %65 }
  0x7b   :  { %v71_v17 = vsel %vm150_vm0, %v66_v15, %v59_v8 }
  0x7c   :  { %v77_v18 = vmul.f32 1.442695, %v71_v17  ;;  %v32_v22 = vpop.permute.xlu1 %31 }
  0x7d   :  { %v36_v26 = vsel %vm150_vm0, %v32_v22, %v18_v6 }
  0x7e   :  { %101 = vpow2.f32 %v77_v18  ;;  %v68_v19 = vpop.permute.xlu0 %67  ;;  %v38_v29 = vsub.f32 %v36_v26, %v34_v25 }
  0x7f   :  { %v72_v20 = vsel %vm150_vm0, %v68_v19, %v60_v9 }
  0x80   :  { %v79_v21 = vmul.f32 1.442695, %v72_v20  ;;  %v64_v33 = vpop.permute.xlu1 %63  ;;  %v40_v34 = vmul.f32 0.5, %v38_v29 }
  0x81   :  { %v70_v38 = vsel %vm150_vm0, %v60_v9, %v64_v33 }
  0x82   :  { %103 = vpow2.f32 %v79_v21  ;;  %v30_v24 = vpop.permute.xlu0 %29  ;;  %v42_v41 = vadd.f32 %v40_v34, %v34_v25  ;;  %v74_v42 = vmul.f32 %v70_v38, %v38_v29 }
  0x83   :  { %v35_v27 = vsel %vm150_vm0, %v30_v24, %v17_v0 }
  0x84   :  { %v37_v28 = vsub.f32 %v35_v27, %v33_v23  ;;  %v76_v49 = vadd.f32 %v74_v42, %v42_v41 }
  0x86   :  { %v39_v30 = vmul.f32 0.5, %v37_v28  ;;  %v62_v31 = vpop.permute.xlu0 %61 }
  0x87   :  { %v69_v32 = vsel %vm150_vm0, %v59_v8, %v62_v31 }
  0x88   :  { %v41_v35 = vadd.f32 %v39_v30, %v33_v23  ;;  %v73_v36 = vmul.f32 %v69_v32, %v37_v28 }
  0x8a   :  { %v75_v43 = vadd.f32 %v73_v36, %v41_v35 }
  0x8b   :  { %v102_v37 = vpop.eup %101 }
  0x8c   :  { %v81_v39 = vmul.f32 %v102_v37, %v37_v28 }
  0x8e   :  { %v83_v40 = vmul.f32 0.5, %v81_v39 }
  0x8f   :  { %v104_v44 = vpop.eup %103 }
  0x90   :  { %v82_v45 = vmul.f32 %v104_v44, %v38_v29  ;;  %v85_v46 = vsub.f32 %v75_v43, %v83_v40  ;;  %v87_v47 = vadd.f32 %v83_v40, %v75_v43 }
  0x92   :  { %v84_v48 = vmul.f32 0.5, %v82_v45  ;;  %v89_v50 = vsel %vm150_vm0, %v85_v46, %v87_v47 }
  0x93   :  { %91 = vst [vmem:[%s184_s4] sm:$0xff] %v89_v50 }
  0x94   :  { %v86_v51 = vsub.f32 %v76_v49, %v84_v48  ;;  %v88_v52 = vadd.f32 %v84_v48, %v76_v49 }
  0x96   :  { %v90_v53 = vsel %vm150_vm0, %v86_v51, %v88_v52 }
  0x97   :  { %92 = vst [vmem:[%s184_s4 + $0x8] sm:$0xff] %v90_v53 }

</bundles_post_ra>
